<compile_context>
chip_gen: v7x
topology: tpu7x:2x2x1
jax: 0.10.0
libtpu: 0.0.40
codegen_flags: <defaults>
</compile_context>

<pallas_src>
import math

import jax
import jax.numpy as jnp
from jax.experimental import pallas as pl
from jax.experimental.pallas import tpu as pltpu


def _softplus(x):
    # log(1 + exp(x)), numerically stable — same form PyTorch's BCEWithLogits uses.
    return jnp.maximum(x, 0.0) + jnp.log1p(jnp.exp(-jnp.abs(x)))


def _thm_kernel(z1_ref, z2_ref, w1_ref, w2_ref, at_ref, pinv_ref, bias_ref,
                out_ref, s_acc, t_rl, t_fk, sp_acc):
    phase = pl.program_id(0)          # 0: readout accumulation, 1: scoring
    j = pl.program_id(1)              # node-tile index
    nt = pl.num_programs(1)

    B, tn, _ = z1_ref.shape
    n_total = tn * nt                 # == num_nodes N

    # h tile in f32 (inputs may arrive as bf16; upcast on the VPU).
    # TODO(synk): for C < 128 only C/128 of each vreg's lanes are used here; a
    # lane-packed (B, N/4, 4*C) view would raise VPU utilization, but the streaming
    # path is HBM-bound so it is omitted (moot for production C >= 128).
    w1 = w1_ref[...].astype(jnp.float32)
    w2 = w2_ref[...].astype(jnp.float32)
    h = (z1_ref[...].astype(jnp.float32) * w1[None, :, :]
         + z2_ref[...].astype(jnp.float32) * w2[None, :, :])          # (B, tn, C)

    @pl.when((phase == 0) & (j == 0))
    def _init():
        s_acc[...] = jnp.zeros_like(s_acc)
        sp_acc[...] = jnp.zeros_like(sp_acc)

    @pl.when(phase == 0)
    def _accumulate_readout():
        s_acc[...] += jnp.sum(h, axis=1)                              # (B, C)

    @pl.when((phase == 1) & (j == 0))
    def _project_summary():
        # AvgReadout: s = sigmoid(mean over nodes).
        s = jax.nn.sigmoid(s_acc[...] * (1.0 / n_total))              # (B, C)
        a_t = at_ref[...]                                             # (C, C) == A.T
        # Bilinear factored: t[b, i] = sum_j A[i, j] * s[b, j].  Tiny -> VPU, full f32.
        t = jnp.sum(s[:, :, None] * a_t[None, :, :], axis=1)          # (B, C)
        t_rl[...] = t
        # Batch shuffle folded onto the summary projection: t_fk[b] = t[invperm[b]].
        t_fk[...] = jnp.sum(pinv_ref[...][:, :, None] * t[None, :, :], axis=1)

    @pl.when(phase == 1)
    def _score_and_accumulate():
        bias = bias_ref[0]
        sc_rl = jnp.sum(h * t_rl[...][:, None, :], axis=-1) + bias    # (B, tn) real logits
        sc_fk = jnp.sum(h * t_fk[...][:, None, :], axis=-1) + bias    # (B, tn) fake logits
        # BCEWithLogits: real block has label 1 -> softplus(-x); fake block -> softplus(x).
        sp_acc[...] += _softplus(-sc_rl) + _softplus(sc_fk)

    @pl.when((phase == 1) & (j == nt - 1))
    def _finalize():
        out_ref[0, 0] = jnp.sum(sp_acc[...]) / (2.0 * B * n_total)


def _pick_node_tile(num_nodes, batch, channels, itemsize, target_tile_bytes=4 << 20):
    """Largest multiple-of-8 divisor of N whose (B, tn, C) tile stays under target."""
    if num_nodes % 8 != 0:
        return num_nodes            # block equal to the full dim is always legal
    max_rows = max(8, target_tile_bytes // max(1, batch * channels * itemsize))
    best = 8
    for tn in range(8, num_nodes + 1, 8):
        if num_nodes % tn == 0 and tn <= max_rows:
            best = tn
    return best


def temporal_hetero_loss(z1, z2, w1, w2, disc_w, disc_b, perm, *, node_tile=None):
    """z1, z2: (B, 1, N, C); w1, w2: (N, C); disc_w: (1, C, C); disc_b: (1,); perm: (B,) int."""
    B = z1.shape[0]
    N, C = w1.shape

    # squeeze(1); keep native dtype (bf16 inputs are upcast inside the kernel).
    z1s = z1.reshape(B, N, C)
    z2s = z2.reshape(B, N, C)
    a_t = jnp.transpose(disc_w[0]).astype(jnp.float32)                # hoisted transpose
    # TODO(synk): torch.randperm is drawn host-side and passed in (as a one-hot
    # inverse-permutation matrix); there is no in-kernel random permutation.
    pinv = jax.nn.one_hot(jnp.argsort(perm), B, dtype=jnp.float32)
    bias = disc_b.reshape(1).astype(jnp.float32)

    z_itemsize = jnp.dtype(z1s.dtype).itemsize
    tn = node_tile if node_tile is not None else _pick_node_tile(N, B, C, z_itemsize)
    assert N % tn == 0, (N, tn)
    nt = N // tn

    z_bytes = B * N * C * z_itemsize
    cost = pl.CostEstimate(
        flops=11 * B * N * C,                            # h (x2 passes) + readout + 2 score dots
        transcendentals=2 * B * N + B * C,               # softplus exps + sigmoid
        bytes_accessed=(4 * z_bytes                      # z1/z2 streamed twice
                        + 4 * N * C * jnp.dtype(w1.dtype).itemsize
                        + 4 * (C * C + B * B) + 8),
    )

    out = pl.pallas_call(
        _thm_kernel,
        out_shape=jax.ShapeDtypeStruct((1, 1), jnp.float32),
        grid=(2, nt),                                    # (phase, node tile)
        in_specs=[
            pl.BlockSpec((B, tn, C), lambda p, j: (0, j, 0)),   # z1 (streamed)
            pl.BlockSpec((B, tn, C), lambda p, j: (0, j, 0)),   # z2 (streamed)
            pl.BlockSpec((tn, C), lambda p, j: (j, 0)),         # W1 tile
            pl.BlockSpec((tn, C), lambda p, j: (j, 0)),         # W2 tile
            pl.BlockSpec((C, C), lambda p, j: (0, 0)),          # A.T (constant block -> one DMA)
            pl.BlockSpec((B, B), lambda p, j: (0, 0)),          # one-hot inv-perm (constant)
            pl.BlockSpec(memory_space=pltpu.SMEM),              # bilinear bias scalar
        ],
        out_specs=pl.BlockSpec(memory_space=pltpu.SMEM),        # scalar loss
        scratch_shapes=[
            pltpu.VMEM((B, C), jnp.float32),    # s_acc: node-sum accumulator
            pltpu.VMEM((B, C), jnp.float32),    # t_rl : A @ s
            pltpu.VMEM((B, C), jnp.float32),    # t_fk : shuffled projection
            pltpu.VMEM((B, tn), jnp.float32),   # softplus accumulator
        ],
        compiler_params=pltpu.CompilerParams(
            # Phase 1 depends on all of phase 0 and every step carries scratch state,
            # so both grid axes are sequential.
            # TODO(synk): a two-call variant with a "parallel" batch-tile axis would let
            # v7x shard tiles across its two TensorCores; not expressed in this single
            # sequential grid.
            dimension_semantics=("arbitrary", "arbitrary"),
            vmem_limit_bytes=48 * 1024 * 1024,
        ),
        cost_estimate=cost,
    )(z1s, z2s, w1, w2, a_t, pinv, bias)
    return out[0, 0]


def _reference(z1, z2, w1, w2, disc_w, disc_b, perm):
    """Pure-JAX mirror of the PyTorch forward (literal formulation)."""
    B = z1.shape[0]
    N, C = w1.shape
    hp = jax.lax.Precision.HIGHEST

    h = (z1 * w1 + z2 * w2).reshape(B, N, C)                       # squeeze(1)
    s = jax.nn.sigmoid(jnp.mean(h, axis=1))                        # (B, C)
    shuf_h = h[perm]
    s_exp = jnp.broadcast_to(s[:, None, :], (B, N, C))
    a0 = disc_w[0]
    sc_rl = jnp.einsum('bni,ij,bnj->bn', h, a0, s_exp, precision=hp) + disc_b[0]
    sc_fk = jnp.einsum('bni,ij,bnj->bn', shuf_h, a0, s_exp, precision=hp) + disc_b[0]
    logits = jnp.concatenate([sc_rl, sc_fk], axis=1)               # (B, 2N)
    lbl = jnp.concatenate([jnp.ones((B, N), jnp.float32),
                           jnp.zeros((B, N), jnp.float32)], axis=1)
    per_elem = (jnp.maximum(logits, 0.0) - logits * lbl
                + jnp.log1p(jnp.exp(-jnp.abs(logits))))
    return jnp.mean(per_elem)


if __name__ == "__main__":
    B, N, C = 4, 16, 32   # batch_size, num_nodes, c_in

    key = jax.random.PRNGKey(0)
    k = jax.random.split(key, 7)

    lim = 1.0 / math.sqrt(C)
    w1 = jax.random.uniform(k[0], (N, C), jnp.float32, -lim, lim)         # nn.Parameter W1
    w2 = jax.random.uniform(k[1], (N, C), jnp.float32, -lim, lim)         # nn.Parameter W2
    disc_w = jax.random.uniform(k[2], (1, C, C), jnp.float32, -lim, lim)  # nn.Bilinear weight
    disc_b = jax.random.uniform(k[3], (1,), jnp.float32, -0.1, 0.1)       # nn.Bilinear bias
    z1 = jax.random.normal(k[4], (B, 1, N, C), jnp.float32)
    z2 = jax.random.normal(k[5], (B, 1, N, C), jnp.float32)
    perm = jax.random.permutation(k[6], B)                                # torch.randperm analogue

    # node_tile=8 -> grid (2 phases x 2 node tiles), exercising the streaming pipeline.
    loss = temporal_hetero_loss(z1, z2, w1, w2, disc_w, disc_b, perm, node_tile=8)
    loss = jax.block_until_ready(loss)

    ref = _reference(z1, z2, w1, w2, disc_w, disc_b, perm)
    assert loss.shape == ()
    assert jnp.allclose(loss, ref, atol=1e-5, rtol=1e-5), (loss, ref)

    print("KERNEL_OK")
</pallas_src>

<mosaic_0001>
module attributes {stable_mosaic.version = 11 : i64} {
  func.func @_thm_kernel(%arg0: i32, %arg1: i32, %arg2: memref<4x8x32xf32, #tpu.memory_space<vmem>>, %arg3: memref<4x8x32xf32, #tpu.memory_space<vmem>>, %arg4: memref<8x32xf32, #tpu.memory_space<vmem>>, %arg5: memref<8x32xf32, #tpu.memory_space<vmem>>, %arg6: memref<32x32xf32, #tpu.memory_space<vmem>>, %arg7: memref<4x4xf32, #tpu.memory_space<vmem>>, %arg8: memref<1xf32, #tpu.memory_space<smem>>, %arg9: memref<1x1xf32, #tpu.memory_space<smem>>, %arg10: memref<4x32xf32, #tpu.memory_space<vmem>>, %arg11: memref<4x32xf32, #tpu.memory_space<vmem>>, %arg12: memref<4x32xf32, #tpu.memory_space<vmem>>, %arg13: memref<4x8xf32, #tpu.memory_space<vmem>>) attributes {dimension_semantics = [#tpu.dimension_semantics<arbitrary>, #tpu.dimension_semantics<arbitrary>], iteration_bounds = array<i64: 2, 2>, scalar_prefetch = 0 : i64, scratch_operands = 4 : i64, tpu.core_type = #tpu.core_type<tc>, window_params = [{transform_indices = @transform_0, window_bounds = array<i64: 4, 8, 32>}, {transform_indices = @transform_1, window_bounds = array<i64: 4, 8, 32>}, {transform_indices = @transform_2, window_bounds = array<i64: 8, 32>}, {transform_indices = @transform_3, window_bounds = array<i64: 8, 32>}, {pipeline_mode = #tpu.pipeline_mode<synchronous>, transform_indices = @transform_4, window_bounds = array<i64: 32, 32>}, {pipeline_mode = #tpu.pipeline_mode<synchronous>, transform_indices = @transform_5, window_bounds = array<i64: 4, 4>}, {transform_indices = @transform_6, window_bounds = array<i64: 1>}, {transform_indices = @transform_7, window_bounds = array<i64: 1, 1>}]} {
    %c0 = arith.constant 0 : index
    %c0_0 = arith.constant 0 : index
    %0 = vector.load %arg4[%c0, %c0_0] : memref<8x32xf32, #tpu.memory_space<vmem>>, vector<8x32xf32>
    %c0_1 = arith.constant 0 : index
    %c0_2 = arith.constant 0 : index
    %1 = vector.load %arg5[%c0_1, %c0_2] : memref<8x32xf32, #tpu.memory_space<vmem>>, vector<8x32xf32>
    %c0_3 = arith.constant 0 : index
    %c0_4 = arith.constant 0 : index
    %c0_5 = arith.constant 0 : index
    %2 = vector.load %arg2[%c0_3, %c0_4, %c0_5] : memref<4x8x32xf32, #tpu.memory_space<vmem>>, vector<4x8x32xf32>
    %3 = vector.shape_cast %0 : vector<8x32xf32> to vector<1x8x32xf32>
    %4 = vector.broadcast %3 : vector<1x8x32xf32> to vector<4x8x32xf32>
    %5 = arith.mulf %2, %4 : vector<4x8x32xf32>
    %c0_6 = arith.constant 0 : index
    %c0_7 = arith.constant 0 : index
    %c0_8 = arith.constant 0 : index
    %6 = vector.load %arg3[%c0_6, %c0_7, %c0_8] : memref<4x8x32xf32, #tpu.memory_space<vmem>>, vector<4x8x32xf32>
    %7 = vector.shape_cast %1 : vector<8x32xf32> to vector<1x8x32xf32>
    %8 = vector.broadcast %7 : vector<1x8x32xf32> to vector<4x8x32xf32>
    %9 = arith.mulf %6, %8 : vector<4x8x32xf32>
    %10 = arith.addf %5, %9 : vector<4x8x32xf32>
    %c0_i32 = arith.constant 0 : i32
    %11 = arith.cmpi eq, %arg0, %c0_i32 : i32
    %c0_i32_9 = arith.constant 0 : i32
    %12 = arith.cmpi eq, %arg1, %c0_i32_9 : i32
    %13 = arith.andi %11, %12 : i1
    %14 = arith.extui %13 : i1 to i32
    %c0_i32_10 = arith.constant 0 : i32
    %15 = arith.cmpi ne, %14, %c0_i32_10 : i32
    scf.if %15 {
      %cst = arith.constant 0.000000e+00 : f32
      %32 = vector.broadcast %cst : f32 to vector<4x32xf32>
      %c0_20 = arith.constant 0 : index
      %c0_21 = arith.constant 0 : index
      %33 = vector.load %arg10[%c0_20, %c0_21] : memref<4x32xf32, #tpu.memory_space<vmem>>, vector<4x32xf32>
      tpu.vector_store %arg10[%c0_20, %c0_21], %32 {strides = array<i32>} : memref<4x32xf32, #tpu.memory_space<vmem>>, vector<4x32xf32>,
      %cst_22 = arith.constant 0.000000e+00 : f32
      %34 = vector.broadcast %cst_22 : f32 to vector<4x8xf32>
      %c0_23 = arith.constant 0 : index
      %c0_24 = arith.constant 0 : index
      %35 = vector.load %arg13[%c0_23, %c0_24] : memref<4x8xf32, #tpu.memory_space<vmem>>, vector<4x8xf32>
      tpu.vector_store %arg13[%c0_23, %c0_24], %34 {strides = array<i32>} : memref<4x8xf32, #tpu.memory_space<vmem>>, vector<4x8xf32>,
    } else {
    }
    %c0_i32_11 = arith.constant 0 : i32
    %16 = arith.cmpi eq, %arg0, %c0_i32_11 : i32
    %17 = arith.extui %16 : i1 to i32
    %c0_i32_12 = arith.constant 0 : i32
    %18 = arith.cmpi ne, %17, %c0_i32_12 : i32
    scf.if %18 {
      %c0_20 = arith.constant 0 : index
      %c0_21 = arith.constant 0 : index
      %32 = vector.load %arg10[%c0_20, %c0_21] : memref<4x32xf32, #tpu.memory_space<vmem>>, vector<4x32xf32>
      %cst = arith.constant dense<0.000000e+00> : vector<4x32xf32>
      %33 = vector.multi_reduction <add>, %10, %cst [1] : vector<4x8x32xf32> to vector<4x32xf32>
      %34 = arith.addf %32, %33 : vector<4x32xf32>
      %c0_22 = arith.constant 0 : index
      %c0_23 = arith.constant 0 : index
      %35 = vector.load %arg10[%c0_22, %c0_23] : memref<4x32xf32, #tpu.memory_space<vmem>>, vector<4x32xf32>
      tpu.vector_store %arg10[%c0_22, %c0_23], %34 {strides = array<i32>} : memref<4x32xf32, #tpu.memory_space<vmem>>, vector<4x32xf32>,
    } else {
    }
    %c1_i32 = arith.constant 1 : i32
    %19 = arith.cmpi eq, %arg0, %c1_i32 : i32
    %c0_i32_13 = arith.constant 0 : i32
    %20 = arith.cmpi eq, %arg1, %c0_i32_13 : i32
    %21 = arith.andi %19, %20 : i1
    %22 = arith.extui %21 : i1 to i32
    %c0_i32_14 = arith.constant 0 : i32
    %23 = arith.cmpi ne, %22, %c0_i32_14 : i32
    scf.if %23 {
      %c0_20 = arith.constant 0 : index
      %c0_21 = arith.constant 0 : index
      %32 = vector.load %arg10[%c0_20, %c0_21] : memref<4x32xf32, #tpu.memory_space<vmem>>, vector<4x32xf32>
      %cst = arith.constant 6.250000e-02 : f32
      %33 = vector.broadcast %cst : f32 to vector<4x32xf32>
      %34 = arith.mulf %32, %33 : vector<4x32xf32>
      %35 = arith.negf %34 : vector<4x32xf32>
      %36 = math.exp %35 : vector<4x32xf32>
      %cst_22 = arith.constant 1.000000e+00 : f32
      %37 = vector.broadcast %cst_22 : f32 to vector<4x32xf32>
      %38 = arith.addf %37, %36 : vector<4x32xf32>
      %39 = arith.divf %37, %38 : vector<4x32xf32>
      %c0_23 = arith.constant 0 : index
      %c0_24 = arith.constant 0 : index
      %40 = vector.load %arg6[%c0_23, %c0_24] : memref<32x32xf32, #tpu.memory_space<vmem>>, vector<32x32xf32>
      %41 = vector.shape_cast %39 : vector<4x32xf32> to vector<4x32x1xf32>
      %42 = vector.shape_cast %40 : vector<32x32xf32> to vector<1x32x32xf32>
      %43 = vector.broadcast %41 : vector<4x32x1xf32> to vector<4x32x32xf32>
      %44 = vector.broadcast %42 : vector<1x32x32xf32> to vector<4x32x32xf32>
      %45 = arith.mulf %43, %44 : vector<4x32x32xf32>
      %cst_25 = arith.constant dense<0.000000e+00> : vector<4x32xf32>
      %46 = vector.multi_reduction <add>, %45, %cst_25 [1] : vector<4x32x32xf32> to vector<4x32xf32>
      %c0_26 = arith.constant 0 : index
      %c0_27 = arith.constant 0 : index
      %47 = vector.load %arg11[%c0_26, %c0_27] : memref<4x32xf32, #tpu.memory_space<vmem>>, vector<4x32xf32>
      tpu.vector_store %arg11[%c0_26, %c0_27], %46 {strides = array<i32>} : memref<4x32xf32, #tpu.memory_space<vmem>>, vector<4x32xf32>,
      %c0_28 = arith.constant 0 : index
      %c0_29 = arith.constant 0 : index
      %48 = vector.load %arg7[%c0_28, %c0_29] : memref<4x4xf32, #tpu.memory_space<vmem>>, vector<4x4xf32>
      %49 = vector.shape_cast %48 : vector<4x4xf32> to vector<4x4x1xf32>
      %50 = vector.shape_cast %46 : vector<4x32xf32> to vector<1x4x32xf32>
      %51 = vector.broadcast %49 : vector<4x4x1xf32> to vector<4x4x32xf32>
      %52 = vector.broadcast %50 : vector<1x4x32xf32> to vector<4x4x32xf32>
      %53 = arith.mulf %51, %52 : vector<4x4x32xf32>
      %cst_30 = arith.constant dense<0.000000e+00> : vector<4x32xf32>
      %54 = vector.multi_reduction <add>, %53, %cst_30 [1] : vector<4x4x32xf32> to vector<4x32xf32>
      %c0_31 = arith.constant 0 : index
      %c0_32 = arith.constant 0 : index
      %55 = vector.load %arg12[%c0_31, %c0_32] : memref<4x32xf32, #tpu.memory_space<vmem>>, vector<4x32xf32>
      tpu.vector_store %arg12[%c0_31, %c0_32], %54 {strides = array<i32>} : memref<4x32xf32, #tpu.memory_space<vmem>>, vector<4x32xf32>,
    } else {
    }
    %c1_i32_15 = arith.constant 1 : i32
    %24 = arith.cmpi eq, %arg0, %c1_i32_15 : i32
    %25 = arith.extui %24 : i1 to i32
    %c0_i32_16 = arith.constant 0 : i32
    %26 = arith.cmpi ne, %25, %c0_i32_16 : i32
    scf.if %26 {
      %c0_20 = arith.constant 0 : index
      %32 = memref.load %arg8[%c0_20] : memref<1xf32, #tpu.memory_space<smem>>
      %c0_21 = arith.constant 0 : index
      %c0_22 = arith.constant 0 : index
      %33 = vector.load %arg11[%c0_21, %c0_22] : memref<4x32xf32, #tpu.memory_space<vmem>>, vector<4x32xf32>
      %34 = vector.shape_cast %33 : vector<4x32xf32> to vector<4x1x32xf32>
      %35 = vector.broadcast %34 : vector<4x1x32xf32> to vector<4x8x32xf32>
      %36 = arith.mulf %10, %35 : vector<4x8x32xf32>
      %cst = arith.constant dense<0.000000e+00> : vector<4x8xf32>
      %37 = vector.multi_reduction <add>, %36, %cst [2] : vector<4x8x32xf32> to vector<4x8xf32>
      %38 = vector.broadcast %32 : f32 to vector<4x8xf32>
      %39 = arith.addf %37, %38 : vector<4x8xf32>
      %c0_23 = arith.constant 0 : index
      %c0_24 = arith.constant 0 : index
      %40 = vector.load %arg12[%c0_23, %c0_24] : memref<4x32xf32, #tpu.memory_space<vmem>>, vector<4x32xf32>
      %41 = vector.shape_cast %40 : vector<4x32xf32> to vector<4x1x32xf32>
      %42 = vector.broadcast %41 : vector<4x1x32xf32> to vector<4x8x32xf32>
      %43 = arith.mulf %10, %42 : vector<4x8x32xf32>
      %cst_25 = arith.constant dense<0.000000e+00> : vector<4x8xf32>
      %44 = vector.multi_reduction <add>, %43, %cst_25 [2] : vector<4x8x32xf32> to vector<4x8xf32>
      %45 = vector.broadcast %32 : f32 to vector<4x8xf32>
      %46 = arith.addf %44, %45 : vector<4x8xf32>
      %c0_26 = arith.constant 0 : index
      %c0_27 = arith.constant 0 : index
      %47 = vector.load %arg13[%c0_26, %c0_27] : memref<4x8xf32, #tpu.memory_space<vmem>>, vector<4x8xf32>
      %cst_28 = arith.constant 0.000000e+00 : f32
      %48 = vector.broadcast %cst_28 : f32 to vector<4x8xf32>
      %49 = arith.subf %48, %39 : vector<4x8xf32>
      %cst_29 = arith.constant 0.000000e+00 : f32
      %50 = vector.broadcast %cst_29 : f32 to vector<4x8xf32>
      %51 = arith.maximumf %49, %50 : vector<4x8xf32>
      %52 = math.absf %49 : vector<4x8xf32>
      %cst_30 = arith.constant 0.000000e+00 : f32
      %53 = vector.broadcast %cst_30 : f32 to vector<4x8xf32>
      %54 = arith.subf %53, %52 : vector<4x8xf32>
      %55 = math.exp %54 : vector<4x8xf32>
      %56 = math.log1p %55 : vector<4x8xf32>
      %57 = arith.addf %51, %56 : vector<4x8xf32>
      %cst_31 = arith.constant 0.000000e+00 : f32
      %58 = vector.broadcast %cst_31 : f32 to vector<4x8xf32>
      %59 = arith.maximumf %46, %58 : vector<4x8xf32>
      %60 = math.absf %46 : vector<4x8xf32>
      %cst_32 = arith.constant 0.000000e+00 : f32
      %61 = vector.broadcast %cst_32 : f32 to vector<4x8xf32>
      %62 = arith.subf %61, %60 : vector<4x8xf32>
      %63 = math.exp %62 : vector<4x8xf32>
      %64 = math.log1p %63 : vector<4x8xf32>
      %65 = arith.addf %59, %64 : vector<4x8xf32>
      %66 = arith.addf %57, %65 : vector<4x8xf32>
      %67 = arith.addf %47, %66 : vector<4x8xf32>
      %c0_33 = arith.constant 0 : index
      %c0_34 = arith.constant 0 : index
      %68 = vector.load %arg13[%c0_33, %c0_34] : memref<4x8xf32, #tpu.memory_space<vmem>>, vector<4x8xf32>
      tpu.vector_store %arg13[%c0_33, %c0_34], %67 {strides = array<i32>} : memref<4x8xf32, #tpu.memory_space<vmem>>, vector<4x8xf32>,
    } else {
    }
    %c1_i32_17 = arith.constant 1 : i32
    %27 = arith.cmpi eq, %arg0, %c1_i32_17 : i32
    %c1_i32_18 = arith.constant 1 : i32
    %28 = arith.cmpi eq, %arg1, %c1_i32_18 : i32
    %29 = arith.andi %27, %28 : i1
    %30 = arith.extui %29 : i1 to i32
    %c0_i32_19 = arith.constant 0 : i32
    %31 = arith.cmpi ne, %30, %c0_i32_19 : i32
    scf.if %31 {
      %c0_20 = arith.constant 0 : index
      %c0_21 = arith.constant 0 : index
      %32 = vector.load %arg13[%c0_20, %c0_21] : memref<4x8xf32, #tpu.memory_space<vmem>>, vector<4x8xf32>
      %33 = vector.shape_cast %32 : vector<4x8xf32> to vector<1x4x8xf32>
      %cst = arith.constant dense<0.000000e+00> : vector<1xf32>
      %34 = vector.multi_reduction <add>, %33, %cst [1, 2] : vector<1x4x8xf32> to vector<1xf32>
      %35 = vector.shape_cast %34 : vector<1xf32> to vector<1x1x1xf32>
      %36 = vector.extract %35[0, 0, 0] : f32 from vector<1x1x1xf32>
      %cst_22 = arith.constant 1.280000e+02 : f32
      %37 = arith.divf %36, %cst_22 : f32
      %c0_23 = arith.constant 0 : index
      %c0_24 = arith.constant 0 : index
      %38 = memref.load %arg9[%c0_23, %c0_24] : memref<1x1xf32, #tpu.memory_space<smem>>
      memref.store %37, %arg9[%c0_23, %c0_24] : memref<1x1xf32, #tpu.memory_space<smem>>
    } else {
    }
    return
  }
  func.func @transform_0(%arg0: i32, %arg1: i32) -> (i32, i32, i32) {
    %c0_i32 = arith.constant 0 : i32
    %c0_i32_0 = arith.constant 0 : i32
    %c0_i32_1 = arith.constant 0 : i32
    return %c0_i32, %arg1, %c0_i32_0 : i32, i32, i32
  }
  func.func @transform_1(%arg0: i32, %arg1: i32) -> (i32, i32, i32) {
    %c0_i32 = arith.constant 0 : i32
    %c0_i32_0 = arith.constant 0 : i32
    %c0_i32_1 = arith.constant 0 : i32
    return %c0_i32, %arg1, %c0_i32_0 : i32, i32, i32
  }
  func.func @transform_2(%arg0: i32, %arg1: i32) -> (i32, i32) {
    %c0_i32 = arith.constant 0 : i32
    %c0_i32_0 = arith.constant 0 : i32
    return %arg1, %c0_i32 : i32, i32
  }
  func.func @transform_3(%arg0: i32, %arg1: i32) -> (i32, i32) {
    %c0_i32 = arith.constant 0 : i32
    %c0_i32_0 = arith.constant 0 : i32
    return %arg1, %c0_i32 : i32, i32
  }
  func.func @transform_4(%arg0: i32, %arg1: i32) -> (i32, i32) {
    %c0_i32 = arith.constant 0 : i32
    %c0_i32_0 = arith.constant 0 : i32
    %c0_i32_1 = arith.constant 0 : i32
    return %c0_i32, %c0_i32_0 : i32, i32
  }
  func.func @transform_5(%arg0: i32, %arg1: i32) -> (i32, i32) {
    %c0_i32 = arith.constant 0 : i32
    %c0_i32_0 = arith.constant 0 : i32
    %c0_i32_1 = arith.constant 0 : i32
    return %c0_i32, %c0_i32_0 : i32, i32
  }
  func.func @transform_6(%arg0: i32, %arg1: i32) -> i32 {
    %c0_i32 = arith.constant 0 : i32
    %c0_i32_0 = arith.constant 0 : i32
    return %c0_i32 : i32
  }
  func.func @transform_7(%arg0: i32, %arg1: i32) -> (i32, i32) {
    %c0_i32 = arith.constant 0 : i32
    %c0_i32_0 = arith.constant 0 : i32
    %c0_i32_1 = arith.constant 0 : i32
    return %c0_i32, %c0_i32_0 : i32, i32
  }
}

</mosaic_0001>

<bundles_post_ra>
// kernel: tpu_custom_call.1
= control target key start
LH: loop header
LB: loop body
LE: loop exit
PB: predicated region body
PF: predicated region fallthrough
CT: control target
= control target key end

     0   :  { %s2173_s0 = inlined_call_operand.hbm [shape: f32[4,16,32], index: 0, kind: input, shape index: {}]   ;;  %s2174_s1 = inlined_call_operand.hbm [shape: f32[4,16,32], index: 1, kind: input, shape index: {}]   ;;  %s2175_s2 = inlined_call_operand.hbm [shape: f32[16,32], index: 2, kind: input, shape index: {}]   ;;  %s2176_s3 = inlined_call_operand.hbm [shape: f32[16,32], index: 3, kind: input, shape index: {}]   ;;  %s2177_s4 = inlined_call_operand.hbm [shape: f32[32,32], index: 4, kind: input, shape index: {}]   ;;  %s2178_s5 = inlined_call_operand.vmem [shape: f32[4,4], index: 5, kind: input, shape index: {}]   ;;  %s2179_s6 = inlined_call_operand.<no memory space> [shape: f32[1], index: 6, kind: input, shape index: {}]   ;;  %s2180_s7 = inlined_call_operand.hbm [shape: f32[1,1], index: 7, kind: output, shape index: {}]  }
   0x1   :  { %2197 = sst [smem:[#allocation28_spill]] %s2174_s1 }
   0x2   :  { %2198 = sst [smem:[#allocation29_spill]] %s2177_s4 }
   0x3   :  { %12 = sst [smem:[#allocation6]] %s2179_s6 }
   0x4   :  { %13 = vsyncpa [#allocation8], 0 }
   0x5   :  { %15 = vsyncpa [#allocation8 + $0x1], 0 }
   0x6   :  { %16 = vsyncpa [#allocation11], 0 }
   0x7   :  { %18 = vsyncpa [#allocation11 + $0x1], 0 }
   0x8   :  { %19 = vsyncpa [#allocation14], 0 }
   0x9   :  { %21 = vsyncpa [#allocation14 + $0x1], 0 }
   0xa   :  { %22 = vsyncpa [#allocation9], 0  ;;  %s1681_s26 = smov 0   ;;  %s1683_s27 = smov 0  }
   0xb   :  { %s1685_s28 = smov 0   ;;  %s1687_s29 = smov 0  }
   0xc   :  { %s1689_s30 = smov 0   ;;  %s1691_s8 = smov 0  }
   0xd   :  { %s1693_s6 = smov 0   ;;  %s1695_s9 = smov 0  }
   0xe LB: > { %2199 = sst [smem:[#allocation22_spill]] %s1605_s28  ;;  %s1720_s10 = sadd.s32 4294967295, %s1625_s9   ;;  %s1625_s9 = sphi %s1695_s9, %s28_s9   ;;  %s1621_s6 = sphi %s1693_s6, %s2240_s6   ;;  %s1617_s8 = sphi %s1691_s8, %s2239_s8   ;;  %s1613_s30 = sphi %s1689_s30, %s2238_s30   ;;  %s1609_s29 = sphi %s1687_s29, %s2237_s29   ;;  %s1605_s28 = sphi %s1685_s28, %s2236_s28   ;;  %s1601_s27 = sphi %s1683_s27, %s2242_s27   ;;  %s1597_s26 = sphi %s1681_s26, %s2241_s26  }
   0xf   : > { %2200 = sst [smem:[#allocation23_spill]] %s1617_s8  ;;  %s47_s11 = sadd.s32 1, %s1605_s28 }
  0x10   : > { %2201 = sst [smem:[#allocation24_spill]] %s1621_s6  ;;  %p54_p0 = scmp.ne.s32.totalorder %s1605_s28, %s1601_s27 }
  0x11   : > { %p55_p1 = scmp.eq.s32.totalorder %s1625_s9, 0  ;;  %p60_p2 = scmp.ne.s32.totalorder %s1601_s27, %s1597_s26 }
  0x12   : > { %p2181_p3 = scmp.eq.s32.totalorder %s1720_s10, 0  ;;  %p1210_p5 = scmp.ge.s32.totalorder %s1625_s9, 1 }
  0x13   : > { %p56_p4 = por %p55_p1, %p54_p0  ;;  %p233_p7 = scmp.lt.s32.totalorder %s1625_s9, 5 }
  0x14   : > { %p1731_p6 = por %p2181_p3, %p60_p2  ;;  %s1627_s14 = smov [#allocation15]  }
  0x15   : > { %p1736_p8 = pnand %p1210_p5, %p233_p7  ;;  %s245_s15 = sshll.u32 %s1627_s14, 4  ;;  %s246_s15 = int_to_ptr.vmem [resolvable:$true] %s245_s15 }
  0x16   : > { %s2202_s12 = scalar_select %p1731_p6, 1, 0 }
  0x17   : > { %s2203_s13 = scalar_select %p1736_p8, 1, 0 }
  0x18   : > { %p1254_p9 = pneg %p1736_p8  ;;  %p1272_p10 = scmp.lt.s32.totalorder %s1625_s9, 4 }
  0x19   : > { %s2206_s4 = sld [smem:[#allocation29_spill]] }
  0x1a   : > { %p1745_p11 = pnand %p1254_p9, %p2181_p3  ;;  %p1749_p12 = pnand %p1272_p10, %p56_p4 }
  0x1c   : > { %s2205_s17 = scalar_select %p1749_p12, 1, 0 }
  0x1d   : > { %p1385_p0 = pneg %p1745_p11 }
  0x1f   : > { %s1383_s20 = scalar_lea.hbm %s2206_s4, 512 }
  0x20   : > { %p1384_p13 = scmp.ne.s32.totalorder %s2206_s4, %s1383_s20  ;;  %p1390_p5 = scmp.lt.u32.totalorder %s1383_s20, %s2206_s4 }
  0x22   : > { %p1386_p1 = pnand %p1385_p0, %p1384_p13 }
  0x24   : > { %p1387_p2 = pneg %p1386_p1 }
  0x26   : > { %p1392_p4 = pnand %p1390_p5, %p1387_p2 }
  0x28   : > { %1395 = shalt.err (!%p1392_p4)
}
  0x29   : > { %s1396_s25 = scalar_lea.vmem %s246_s15, 512  ;;  %p1404_p3 = scmp.lt.s32.totalorder %s246_s15, %s246_s15 }
  0x2a   : > { %p1397_p7 = scmp.ne.s32.totalorder %s246_s15, %s1396_s25  ;;  %p1405_p6 = scmp.lt.s32.totalorder %s1396_s25, %s1396_s25 }
  0x2c   : > { %p1399_p9 = pnand %p1397_p7, %p1385_p0  ;;  %p1406_p8 = por %p1405_p6, %p1404_p3 }
  0x2e   : > { %p1400_p10 = pneg %p1399_p9 }
  0x30   : > { %p1407_p12 = pnand %p1406_p8, %p1400_p10 }
  0x32   : > { %1410 = shalt.err (!%p1407_p12)
}
  0x33   : > { %s2185_s26 = smov 128   ;;  %s2187_s14 = smov 8  }
  0x34   : > { %1257 = dma.hbm_to_vmem [thread:$0]  (!%p1745_p11), %s2206_s4, 512, %s246_s15, [#allocation14], %s2185_s26, %s2185_s26, %s2187_s14  }
  0x35   : > { %s37_s20 = sadd.s32 1, %s1617_s8  ;;  %s40_s21 = sadd.s32 1, %s1621_s6 }
  0x36   : > { %p38_p3 = scmp.ge.s32.totalorder %s37_s20, 2  ;;  %s1775_s22 = sand.u32 1, %s1605_s28  }
  0x37   : > { %s2189_s23 = sshll.u32 %s1775_s22, 5  ;;  %s1779_s24 = sshll.u32 %s1617_s8, 7 }
  0x38   : > { %s2244_s20 = smov (%p38_p3, %s37_s20), 0  ;;  %s2246_s21 = smov (!%p38_p3, %s40_s21), %s1621_s6 }
  0x39   : > { %2207 = sst [smem:[#allocation25_spill]] %s2244_s20  ;;  %s44_s16 = ssub.s32 %s1617_s8, %s2244_s20 }
  0x3a   : > { %p42_p6 = scmp.ge.s32.totalorder %s2246_s21, 2  ;;  %p45_p8 = scmp.eq.s32.totalorder %s44_s16, 0 }
  0x3b   : > { %s2191_s15 = sand.u32 1, %s1625_s9   ;;  %s2210_s1 = sld [smem:[#allocation28_spill]] }
  0x3c   : > { %s2248_s21 = smov (%p42_p6, %s2246_s21), 0  ;;  %s289_s14 = scalar_lea.vmem [#allocation10], %s2189_s23 }
  0x3d   : > { %2208 = sst [smem:[#allocation26_spill]] %s2248_s21  ;;  %s295_s4 = sshll.u32 %s289_s14, 4  ;;  %s1802_s4 = int_to_ptr.vmem [resolvable:$true] %s295_s4 }
  0x3e   : > { %s1792_s25 = scalar_select %p45_p8, %s1605_s28, %s47_s11  }
  0x3f   : > { %s1806_s16 = scalar_lea.sflag [#allocation11], %s2191_s15  ;;  %p2211_p12 = scmp.ne.s32.totalorder %s2205_s17, 0 }
  0x40   : > { %2209 = sst [smem:[#allocation27_spill]] %s1792_s25 }
  0x41   : > { %s1798_s26 = scalar_lea.hbm %s2210_s1, %s1779_s24  ;;  %p1812_p13 = pneg %p2211_p12 }
  0x42   : > { %s1411_s21 = scalar_lea.hbm %s1798_s26, 512  ;;  %s1416_s14 = scalar_lea.hbm %s2210_s1, 1024 }
  0x43   : > { %p1412_p11 = scmp.ne.s32.totalorder %s1798_s26, %s1411_s21  ;;  %p1417_p2 = scmp.lt.u32.totalorder %s1798_s26, %s2210_s1 }
  0x44   : > { %p1418_p5 = scmp.lt.u32.totalorder %s1416_s14, %s1411_s21  ;;  %p1420_p7 = scmp.lt.u32.totalorder %s1411_s21, %s1798_s26 }
  0x45   : > { %p1414_p0 = pnand %p1812_p13, %p1412_p11 }
  0x46   : > { %p1419_p4 = por %p1418_p5, %p1417_p2 }
  0x47   : > { %p1415_p1 = pneg %p1414_p0 }
  0x48   : > { %p1421_p9 = por %p1420_p7, %p1419_p4 }
  0x4a   : > { %p1422_p10 = pnand %p1421_p9, %p1415_p1 }
  0x4c   : > { %1425 = shalt.err (!%p1422_p10)
}
  0x4d   : > { %s1426_s15 = scalar_lea.vmem %s1802_s4, 512  ;;  %s1630_s18 = smov [#allocation10]  }
  0x4e   : > { %p1427_p3 = scmp.ne.s32.totalorder %s1802_s4, %s1426_s15  ;;  %s1431_s19 = sshll.u32 %s1630_s18, 4  ;;  %s1432_s19 = int_to_ptr.vmem [resolvable:$false] %s1431_s19 }
  0x4f   : > { %s1433_s20 = scalar_lea.vmem %s1432_s19, 1024  ;;  %p1434_p11 = scmp.lt.s32.totalorder %s1802_s4, %s1432_s19 }
  0x50   : > { %p1429_p6 = pnand %p1427_p3, %p1812_p13  ;;  %p1435_p0 = scmp.lt.s32.totalorder %s1433_s20, %s1426_s15 }
  0x52   : > { %p1430_p8 = pneg %p1429_p6  ;;  %p1436_p2 = por %p1435_p0, %p1434_p11 }
  0x54   : > { %p1437_p5 = pnand %p1436_p2, %p1430_p8 }
  0x56   : > { %1440 = shalt.err (!%p1437_p5)
}
  0x57   : > { %s2195_s21 = smov 256   ;;  %s2213_s23 = smov 8  }
  0x58   : > { %s2214_s14 = smov 128   ;;  %s1843_s19 = scalar_lea.hbm %s2173_s0, %s1779_s24 }
  0x59   : > { %1264 = dma.hbm_to_vmem [thread:$0]  (!%p2211_p12), %s1798_s26, 512, %s1802_s4, %s1806_s16, %s2195_s21, %s2214_s14, %s2213_s23  }
  0x5a   : > { %s2215_s20 = sshll.u32 %s1775_s22, 5  ;;  %s1217_s8 = sshll.u32 %s1775_s22, 3 }
  0x5b   : > { %s269_s1 = scalar_lea.vmem [#allocation7], %s2215_s20  ;;  %s266_s25 = scalar_lea.sflag [#allocation8], %s1775_s22 }
  0x5c   : > { %s275_s6 = sshll.u32 %s269_s1, 4  ;;  %s1441_s28 = scalar_lea.hbm %s1843_s19, 512  ;;  %s1847_s6 = int_to_ptr.vmem [resolvable:$true] %s275_s6 }
  0x5d   : > { %p1442_p1 = scmp.ne.s32.totalorder %s1843_s19, %s1441_s28  ;;  %s1446_s18 = scalar_lea.hbm %s2173_s0, 1024 }
  0x5e   : > { %p1447_p9 = scmp.lt.u32.totalorder %s1843_s19, %s2173_s0  ;;  %p1448_p10 = scmp.lt.u32.totalorder %s1446_s18, %s1441_s28 }
  0x5f   : > { %p1444_p4 = pnand %p1442_p1, %p1812_p13  ;;  %p1450_p6 = scmp.lt.u32.totalorder %s1441_s28, %s1843_s19 }
  0x60   : > { %p1449_p3 = por %p1448_p10, %p1447_p9 }
  0x61   : > { %p1445_p7 = pneg %p1444_p4 }
  0x62   : > { %p1451_p8 = por %p1450_p6, %p1449_p3 }
  0x64   : > { %p1452_p11 = pnand %p1451_p8, %p1445_p7 }
  0x66   : > { %1455 = shalt.err (!%p1452_p11)
}
  0x67   : > { %s1456_s1 = scalar_lea.vmem %s1847_s6, 512  ;;  %s1632_s20 = smov [#allocation7]  }
  0x68   : > { %p1457_p0 = scmp.ne.s32.totalorder %s1847_s6, %s1456_s1  ;;  %s1461_s4 = sshll.u32 %s1632_s20, 4  ;;  %s1462_s4 = int_to_ptr.vmem [resolvable:$false] %s1461_s4 }
  0x69   : > { %s1463_s21 = scalar_lea.vmem %s1462_s4, 1024  ;;  %p1464_p1 = scmp.lt.s32.totalorder %s1847_s6, %s1462_s4 }
  0x6a   : > { %p1459_p2 = pnand %p1457_p0, %p1812_p13  ;;  %p1465_p4 = scmp.lt.s32.totalorder %s1463_s21, %s1456_s1 }
  0x6c   : > { %p1460_p5 = pneg %p1459_p2  ;;  %p1466_p9 = por %p1465_p4, %p1464_p1 }
  0x6e   : > { %p1467_p10 = pnand %p1466_p9, %p1460_p5 }
  0x70   : > { %1470 = shalt.err (!%p1467_p10)
}
  0x71   : > { %s2216_s28 = smov 256   ;;  %s1881_s15 = scalar_lea.hbm %s2175_s2, %s1779_s24 }
  0x72   : > { %1261 = dma.hbm_to_vmem [thread:$0]  (!%p2211_p12), %s1843_s19, 512, %s1847_s6, %s266_s25, %s2216_s28, %s2214_s14, %s2213_s23  }
  0x73   : > { %s309_s1 = scalar_lea.vmem [#allocation12], %s1217_s8  ;;  %s1471_s4 = scalar_lea.hbm %s1881_s15, 128 }
  0x74   : > { %s316_s20 = sshll.u32 %s309_s1, 4  ;;  %p1472_p7 = scmp.ne.s32.totalorder %s1881_s15, %s1471_s4  ;;  %s317_s20 = int_to_ptr.vmem [resolvable:$true] %s316_s20 }
  0x75   : > { %s1476_s25 = scalar_lea.hbm %s2175_s2, 256  ;;  %p1477_p8 = scmp.lt.u32.totalorder %s1881_s15, %s2175_s2 }
  0x76   : > { %p1474_p3 = pnand %p1472_p7, %p1812_p13  ;;  %p1478_p11 = scmp.lt.u32.totalorder %s1476_s25, %s1471_s4 }
  0x77   : > { %p1480_p2 = scmp.lt.u32.totalorder %s1471_s4, %s1881_s15 }
  0x78   : > { %p1475_p6 = pneg %p1474_p3  ;;  %p1479_p0 = por %p1478_p11, %p1477_p8 }
  0x7a   : > { %p1481_p5 = por %p1480_p2, %p1479_p0 }
  0x7c   : > { %p1482_p1 = pnand %p1481_p5, %p1475_p6 }
  0x7e   : > { %1485 = shalt.err (!%p1482_p1)
}
  0x7f   : > { %s1486_s19 = scalar_lea.vmem %s317_s20, 128  ;;  %s1633_s28 = smov [#allocation12]  }
  0x80   : > { %p1487_p4 = scmp.ne.s32.totalorder %s317_s20, %s1486_s19  ;;  %s1491_s26 = sshll.u32 %s1633_s28, 4  ;;  %s1492_s26 = int_to_ptr.vmem [resolvable:$false] %s1491_s26 }
  0x81   : > { %s1493_s18 = scalar_lea.vmem %s1492_s26, 256  ;;  %p1494_p7 = scmp.lt.s32.totalorder %s317_s20, %s1492_s26 }
  0x82   : > { %p1489_p9 = pnand %p1487_p4, %p1812_p13  ;;  %p1495_p3 = scmp.lt.s32.totalorder %s1493_s18, %s1486_s19 }
  0x84   : > { %p1490_p10 = pneg %p1489_p9  ;;  %p1496_p12 = por %p1495_p3, %p1494_p7 }
  0x86   : > { %p1497_p8 = pnand %p1496_p12, %p1490_p10 }
  0x88   : > { %1500 = shalt.err (!%p1497_p8)
}
  0x89   : > { %p2217_p11 = scmp.ne.s32.totalorder %s2205_s17, 0  ;;  %s1907_s21 = scalar_lea.hbm %s2176_s3, %s1779_s24 }
  0x8a   : > { %s327_s6 = scalar_lea.vmem [#allocation13], %s1217_s8  ;;  %s2218_s23 = sand.u32 1, %s1625_s9  }
  0x8b   : > { %1267 = dma.hbm_to_vmem [thread:$0]  (!%p2217_p11), %s1881_s15, 128, %s317_s20, %s1806_s16  }
  0x8c   : > { %s334_s25 = sshll.u32 %s327_s6, 4  ;;  %s324_s14 = scalar_lea.sflag [#allocation14], %s2218_s23  ;;  %s335_s25 = int_to_ptr.vmem [resolvable:$true] %s334_s25 }
  0x8d   : > { %s1501_s19 = scalar_lea.hbm %s1907_s21, 128  ;;  %s1506_s24 = scalar_lea.hbm %s2176_s3, 256 }
  0x8e   : > { %p1502_p12 = scmp.ne.s32.totalorder %s1907_s21, %s1501_s19  ;;  %p1507_p2 = scmp.lt.u32.totalorder %s1907_s21, %s2176_s3 }
  0x8f   : > { %p1508_p5 = scmp.lt.u32.totalorder %s1506_s24, %s1501_s19  ;;  %p1510_p4 = scmp.lt.u32.totalorder %s1501_s19, %s1907_s21 }
  0x90   : > { %p1504_p6 = pnand %p1502_p12, %p1812_p13 }
  0x91   : > { %p1509_p1 = por %p1508_p5, %p1507_p2 }
  0x92   : > { %p1505_p0 = pneg %p1504_p6 }
  0x93   : > { %p1511_p9 = por %p1510_p4, %p1509_p1 }
  0x95   : > { %p1512_p10 = pnand %p1511_p9, %p1505_p0 }
  0x97   : > { %1515 = shalt.err (!%p1512_p10)
}
  0x98   : > { %s1516_s8 = scalar_lea.vmem %s335_s25, 128  ;;  %s1634_s28 = smov [#allocation13]  }
  0x99   : > { %p1517_p7 = scmp.ne.s32.totalorder %s335_s25, %s1516_s8  ;;  %s1521_s26 = sshll.u32 %s1634_s28, 4  ;;  %s1522_s26 = int_to_ptr.vmem [resolvable:$false] %s1521_s26 }
  0x9a   : > { %s1523_s18 = scalar_lea.vmem %s1522_s26, 256  ;;  %p1524_p12 = scmp.lt.s32.totalorder %s335_s25, %s1522_s26 }
  0x9b   : > { %p1519_p3 = pnand %p1517_p7, %p1812_p13  ;;  %p1525_p6 = scmp.lt.s32.totalorder %s1523_s18, %s1516_s8 }
  0x9d   : > { %p1520_p8 = pneg %p1519_p3  ;;  %p1526_p11 = por %p1525_p6, %p1524_p12 }
  0x9f   : > { %p1527_p2 = pnand %p1526_p11, %p1520_p8 }
  0xa1   : > { %1530 = shalt.err (!%p1527_p2)
}
  0xa2   : > { %p2219_p5 = scmp.ne.s32.totalorder %s2205_s17, 0  ;;  %p2220_p0 = scmp.ne.s32.totalorder %s2203_s13, 0 }
  0xa3   : > { %s345_s11 = sand.u32 (!%p2220_p0), 1, %s1601_s27   ;;  %p2221_p13 = scmp.ne.s32.totalorder (!%p2220_p0), %s2202_s12, 0 }
  0xa4   : > { %1270 = dma.hbm_to_vmem [thread:$0]  (!%p2219_p5), %s1907_s21, 128, %s335_s25, %s324_s14  }
  0xa5   : > { %343 = sbr.rel (%p2220_p0) target bundleno = 877 (0x36d), region = 48  ;;  %s1222_s1 = sshll.u32 (!%p2220_p0), %s345_s11, 5 }
  0xa6   : > { %s346_s4 = scalar_lea.sflag (!%p2220_p0), [#allocation8], %s345_s11  ;;  %s349_s6 = scalar_lea.vmem (!%p2220_p0), [#allocation7], %s1222_s1 }
  0xac   : > { %1576 = dma.done.wait (%p2221_p13), %s346_s4, 512  }
  0xad   : > { %1578 = vsyncadd (%p2221_p13), %s346_s4, 4294966784  ;;  %s354_s23 = sand.u32 1, %s1720_s10   ;;  %s358_s19 = scalar_lea.vmem [#allocation10], %s1222_s1 }
  0xae   : > { %s355_s17 = scalar_lea.sflag [#allocation11], %s354_s23 }
  0xaf   : > { %1580 = dma.done.wait (%p2221_p13), %s355_s17, 640  }
  0xb0   : > { %1582 = vsyncadd (%p2221_p13), %s355_s17, 4294966656  ;;  %s1224_s13 = sshll.u32 %s345_s11, 3  ;;  %s373_s25 = scalar_lea.sflag [#allocation14], %s354_s23 }
  0xb1   : > { %s367_s21 = scalar_lea.vmem [#allocation12], %s1224_s13  ;;  %s376_s14 = scalar_lea.vmem [#allocation13], %s1224_s13 }
  0xb2   : > { %1584 = dma.done.wait (%p2221_p13), %s373_s25, 128  }
  0xb3   : > { %1586 = vsyncadd (%p2221_p13), %s373_s25, 4294967168  ;;  %p2222_p11 = scmp.eq.s32.totalorder %s1720_s10, 0 }
  0xb5   : > { %1588 = dma.done.wait (%p2222_p11), [#allocation14], 512   ;;  %p2223_p1 = pmov %p2222_p11 }
  0xb6   : > { %p443_p4 = scmp.eq.s32.totalorder %s1613_s30, 0  ;;  %p444_p9 = scmp.eq.s32.totalorder %s1609_s29, 0  ;;  %v421_v0 = vld [vmem:[%s367_s21] sm:$0xff]  ;;  %v422_v1 = vld [vmem:[%s376_s14] sm:$0xff] }
  0xb7   : > { %1590 = vsyncadd (%p2223_p1), [#allocation14], 4294966784  ;;  %v423_v2 = vld [vmem:[%s349_s6] sm:$0xff]  ;;  %v424_v3 = vld [vmem:[%s349_s6 + $0x8] sm:$0xff] }
  0xb8   : > { %p1954_p10 = pnand %p444_p9, %p443_p4  ;;  %v425_v4 = vld [vmem:[%s349_s6 + $0x10] sm:$0xff]  ;;  %v426_v5 = vld [vmem:[%s349_s6 + $0x18] sm:$0xff]  ;;  %v427_v6 = vmul.f32 %v423_v2, %v421_v0  ;;  %v428_v7 = vmul.f32 %v424_v3, %v421_v0  ;;  %v431_v10 = vld [vmem:[%s358_s19] sm:$0xff] }
  0xb9   : > { %v429_v8 = vmul.f32 %v425_v4, %v421_v0  ;;  %v430_v9 = vmul.f32 %v426_v5, %v421_v0  ;;  %v432_v11 = vld [vmem:[%s358_s19 + $0x8] sm:$0xff]  ;;  %v433_v12 = vld [vmem:[%s358_s19 + $0x10] sm:$0xff]  ;;  %v434_v13 = vld [vmem:[%s358_s19 + $0x18] sm:$0xff]  ;;  %v435_v14 = vmul.f32 %v431_v10, %v422_v1  ;;  %vm449_vm0 = vcmask (!%p1954_p10), 257024  }
  0xba   : > { %v436_v15 = vmul.f32 %v432_v11, %v422_v1  ;;  %v437_v16 = vmul.f32 %v433_v12, %v422_v1  ;;  %v438_v17 = vmul.f32 %v434_v13, %v422_v1  ;;  %448 = sbr.rel (%p1954_p10) target bundleno = 193 (0xc1), region = 72  ;;  %vm451_vm1 = vcmask (!%p1954_p10), 60416  }
  0xbb   : > { %v1958_v18 = vadd.f32 %v435_v14, %v427_v6  ;;  %v1635_v22 = vmov (!%p1954_p10), 0.0  }
  0xbc   : > { %v1960_v19 = vadd.f32 %v436_v15, %v428_v7  ;;  %v1962_v20 = vadd.f32 %v437_v16, %v429_v8  ;;  %v1964_v21 = vadd.f32 %v438_v17, %v430_v9  ;;  %450 = vst.msk [vmem:[#allocation2] sm:$0xf] (!%p1954_p10), %vm449_vm0, %v1635_v22 }
  0xbd   : > { %452 = vst.msk [vmem:[#allocation5] sm:$0xf] (!%p1954_p10), %vm451_vm1, %v1635_v22 }
  0xc1 PF: > { %p1227_p7 = scmp.ne.s32.totalorder %s1613_s30, 0 }
  0xc2   : > { %vm457_vm2 = vcmask (!%p1227_p7), 261120   ;;  %vm490_vm3 = vcmask (!%p1227_p7), 1041409   ;;  %vm492_vm4 = vcmask (!%p1227_p7), 1042434   ;;  %vm494_vm5 = vcmask (!%p1227_p7), 1043459  }
  0xc3   : > { %455 = sbr.rel (%p1227_p7) target bundleno = 214 (0xd6), region = 76  ;;  %v458_v23 = vsel (!%p1227_p7), %vm457_vm2, %v1958_v18, 0.0  ;;  %v465_v24 = vsel (!%p1227_p7), %vm457_vm2, %v1960_v19, 0.0  ;;  %v472_v25 = vsel (!%p1227_p7), %vm457_vm2, %v1962_v20, 0.0  ;;  %v479_v26 = vsel (!%p1227_p7), %vm457_vm2, %v1964_v21, 0.0 }
  0xc4   : > { %v459_v27 = vrot.slane (!%p1227_p7), %v458_v23, 4  ;;  %v466_v28 = vrot.slane (!%p1227_p7), %v465_v24, 4  ;;  %v473_v29 = vrot.slane (!%p1227_p7), %v472_v25, 4  ;;  %v480_v30 = vrot.slane (!%p1227_p7), %v479_v26, 4  ;;  %v456_v51 = vld [vmem:[#allocation2] sm:$0xf] (!%p1227_p7) }
  0xc5   : > { %vm498_vm6 = vcmask (!%p1227_p7), 257024  }
  0xc6   : > { %v460_v31 = vadd.f32 (!%p1227_p7), %v459_v27, %v458_v23  ;;  %v467_v32 = vadd.f32 (!%p1227_p7), %v466_v28, %v465_v24  ;;  %v474_v33 = vadd.f32 (!%p1227_p7), %v473_v29, %v472_v25  ;;  %v481_v34 = vadd.f32 (!%p1227_p7), %v480_v30, %v479_v26 }
  0xc8   : > { %v461_v35 = vrot.slane (!%p1227_p7), %v460_v31, 2  ;;  %v468_v36 = vrot.slane (!%p1227_p7), %v467_v32, 2  ;;  %v475_v37 = vrot.slane (!%p1227_p7), %v474_v33, 2  ;;  %v482_v38 = vrot.slane (!%p1227_p7), %v481_v34, 2 }
  0xca   : > { %v462_v39 = vadd.f32 %v461_v35, %v460_v31  ;;  %v469_v40 = vadd.f32 %v468_v36, %v467_v32  ;;  %v476_v41 = vadd.f32 %v475_v37, %v474_v33  ;;  %v483_v42 = vadd.f32 %v482_v38, %v481_v34 }
  0xcc   : > { %v463_v43 = vrot.slane %v462_v39, 1  ;;  %v470_v44 = vrot.slane %v469_v40, 1  ;;  %v477_v45 = vrot.slane %v476_v41, 1  ;;  %v484_v46 = vrot.slane %v483_v42, 1 }
  0xce   : > { %v464_v47 = vadd.f32 %v463_v43, %v462_v39  ;;  %v471_v48 = vadd.f32 %v470_v44, %v469_v40  ;;  %v478_v49 = vadd.f32 %v477_v45, %v476_v41  ;;  %v485_v50 = vadd.f32 %v484_v46, %v483_v42 }
  0xd0   : > { %v491_v52 = vsel %vm490_vm3, %v471_v48, %v464_v47 }
  0xd1   : > { %v493_v53 = vsel %vm492_vm4, %v478_v49, %v491_v52 }
  0xd2   : > { %v495_v54 = vsel %vm494_vm5, %v485_v50, %v493_v53 }
  0xd3   : > { %v497_v55 = vadd.f32 %v495_v54, %v456_v51 }
  0xd5   : > { %499 = vst.msk [vmem:[#allocation2] sm:$0xf] %vm498_vm6, %v497_v55 }
  0xd6 PF: > { %p500_p3 = scmp.eq.s32.totalorder %s1613_s30, 1 }
  0xd8   : > { %p501_p8 = pnand %p500_p3, %p444_p9 }
  0xd9   : > { %v517_v61 = vlaneseq (!%p501_p8)  ;;  %v675_v8 = vld [vmem:[%s2178_s5] sm:$0xf] (!%p501_p8)  ;;  %v514_v23 = vld [vmem:[#allocation15 + $0x8] sm:$0xff] (!%p501_p8)  ;;  %v513_v24 = vld [vmem:[#allocation15] sm:$0xff] (!%p501_p8)  ;;  %vm609_vm7 = vcmask (!%p501_p8), 261120   ;;  %vm666_vm8 = vcmask (!%p501_p8), 1041409  }
  0xda   : > { %504 = sbr.rel (%p501_p8) target bundleno = 432 (0x1b0), region = 80  ;;  %v515_v25 = vld [vmem:[#allocation15 + $0x10] sm:$0xff] (!%p501_p8)  ;;  %v516_v35 = vld [vmem:[#allocation15 + $0x18] sm:$0xff] (!%p501_p8)  ;;  %vm668_vm9 = vcmask (!%p501_p8), 1042434   ;;  %vm670_vm10 = vcmask (!%p501_p8), 1043459   ;;  %vm673_vm11 = vcmask (!%p501_p8), 257024  }
  0xdb   : > { %v518_v62 = vshrl.u32 (!%p501_p8), %v517_v61, 7 }
  0xdc   : > { %v505_v56 = vld [vmem:[#allocation2] sm:$0xf] (!%p501_p8) }
  0xdd   : > { %v1228_v57 = vmul.f32 (!%p501_p8), -0.0625, %v505_v56  ;;  %v538_v63 = vsub.s32 (!%p501_p8), 1, %v518_v62  ;;  %v519_v0 = vsub.s32 (!%p501_p8), 0, %v518_v62  ;;  %v557_v4 = vsub.s32 (!%p501_p8), 2, %v518_v62 }
  0xde   : > { %v576_v6 = vsub.s32 (!%p501_p8), 3, %v518_v62 }
  0xdf   : > { %v508_v58 = vmul.f32 (!%p501_p8), 1.442695, %v1228_v57  ;;  %v686_v9 = vrot.slane (!%p501_p8), %v675_v8, %v538_v63  ;;  %v679_v10 = vrot.slane (!%p501_p8), %v675_v8, %v519_v0  ;;  %v693_v12 = vrot.slane (!%p501_p8), %v675_v8, %v557_v4 }
  0xe0   : > { %v700_v11 = vrot.slane (!%p501_p8), %v675_v8, %v576_v6 }
  0xe1   : > { %1347 = vpow2.f32 %v508_v58 }
  0xeb   : > { %v1348_v59 = vpop.eup %1347 }
  0xec   : > { %v510_v60 = vadd.f32 1.0, %v1348_v59 }
  0xee   : > { %1349 = vrcp.f32 %v510_v60 }
  0xf8   : > { %v1350_v1 = vpop.eup %1349 }
  0xf9   : > { %v539_v2 = vrot.slane %v1350_v1, %v538_v63  ;;  %v520_v3 = vrot.slane %v1350_v1, %v519_v0  ;;  %v558_v5 = vrot.slane %v1350_v1, %v557_v4  ;;  %v577_v7 = vrot.slane %v1350_v1, %v576_v6 }
  0xfb   : > { %541 = vbcast.lane.b32.xlu1 %v539_v2, 256  ;;  %522 = vbcast.lane.b32.xlu0 %v520_v3, 256 }
  0xff   : > { %545 = vbcast.lane.b32.xlu1 %v539_v2, 264  ;;  %526 = vbcast.lane.b32.xlu0 %v520_v3, 264 }
 0x103   : > { %564 = vbcast.lane.b32.xlu1 %v558_v5, 264  ;;  %560 = vbcast.lane.b32.xlu0 %v558_v5, 256 }
 0x107   : > { %549 = vbcast.lane.b32.xlu1 %v539_v2, 272  ;;  %530 = vbcast.lane.b32.xlu0 %v520_v3, 272 }
 0x10b   : > { %583 = vbcast.lane.b32.xlu1 %v577_v7, 264  ;;  %579 = vbcast.lane.b32.xlu0 %v577_v7, 256 }
 0x10f   : > { %534 = vbcast.lane.b32.xlu1 %v520_v3, 280  ;;  %568 = vbcast.lane.b32.xlu0 %v558_v5, 272 }
 0x113   : > { %587 = vbcast.lane.b32.xlu1 %v577_v7, 272  ;;  %553 = vbcast.lane.b32.xlu0 %v539_v2, 280 }
 0x117   : > { %591 = vbcast.lane.b32.xlu1 %v577_v7, 280  ;;  %572 = vbcast.lane.b32.xlu0 %v558_v5, 280 }
 0x11b   : > { %688 = vbcast.lane.b32.xlu1 %v686_v9, 256  ;;  %681 = vbcast.lane.b32.xlu0 %v679_v10, 256 }
 0x11f   : > { %702 = vbcast.lane.b32.xlu1 %v700_v11, 256  ;;  %695 = vbcast.lane.b32.xlu0 %v693_v12, 256 }
 0x16d   : > { %v542_v13 = vpop.permute.xlu1 %541  ;;  %v523_v14 = vpop.permute.xlu0 %522 }
 0x16e   : > { %v593_v29 = vmul.f32 %v523_v14, %v513_v24  ;;  %v597_v36 = vmul.f32 %v542_v13, %v513_v24 }
 0x170   : > { %v610_v37 = vsel %vm609_vm7, %v593_v29, 0.0  ;;  %v623_v50 = vsel %vm609_vm7, %v597_v36, 0.0 }
 0x171   : > { %v546_v15 = vpop.permute.xlu1 %545  ;;  %v527_v16 = vpop.permute.xlu0 %526 }
 0x172   : > { %v594_v28 = vmul.f32 %v527_v16, %v514_v23  ;;  %v598_v33 = vmul.f32 %v546_v15, %v514_v23 }
 0x174   : > { %v611_v34 = vsel %vm609_vm7, %v594_v28, 0.0  ;;  %v624_v45 = vsel %vm609_vm7, %v598_v33, 0.0 }
 0x175   : > { %v565_v17 = vpop.permute.xlu1 %564  ;;  %v561_v22 = vpop.permute.xlu0 %560  ;;  %v612_v40 = vadd.f32 %v611_v34, %v610_v37  ;;  %v625_v54 = vadd.f32 %v624_v45, %v623_v50 }
 0x176   : > { %v602_v41 = vmul.f32 %v565_v17, %v514_v23  ;;  %v601_v42 = vmul.f32 %v561_v22, %v513_v24 }
 0x178   : > { %v637_v55 = vsel %vm609_vm7, %v602_v41, 0.0  ;;  %v636_v56 = vsel %vm609_vm7, %v601_v42, 0.0 }
 0x179   : > { %v550_v26 = vpop.permute.xlu1 %549  ;;  %v531_v27 = vpop.permute.xlu0 %530  ;;  %v638_v5 = vadd.f32 %v637_v55, %v636_v56 }
 0x17a   : > { %v595_v30 = vmul.f32 %v531_v27, %v515_v25  ;;  %v599_v38 = vmul.f32 %v550_v26, %v515_v25 }
 0x17c   : > { %v613_v39 = vsel %vm609_vm7, %v595_v30, 0.0  ;;  %v626_v51 = vsel %vm609_vm7, %v599_v38, 0.0 }
 0x17d   : > { %v584_v31 = vpop.permute.xlu1 %583  ;;  %v580_v32 = vpop.permute.xlu0 %579  ;;  %v614_v49 = vadd.f32 %v613_v39, %v612_v40  ;;  %v627_v0 = vadd.f32 %v626_v51, %v625_v54 }
 0x17e   : > { %v606_v46 = vmul.f32 %v584_v31, %v514_v23  ;;  %v605_v47 = vmul.f32 %v580_v32, %v513_v24 }
 0x180   : > { %v650_v60 = vsel %vm609_vm7, %v606_v46, 0.0  ;;  %v649_v61 = vsel %vm609_vm7, %v605_v47, 0.0 }
 0x181   : > { %v535_v43 = vpop.permute.xlu1 %534  ;;  %v569_v44 = vpop.permute.xlu0 %568  ;;  %v651_v6 = vadd.f32 %v650_v60, %v649_v61 }
 0x182   : > { %v596_v48 = vmul.f32 %v535_v43, %v516_v35  ;;  %v603_v53 = vmul.f32 %v569_v44, %v515_v25 }
 0x184   : > { %v615_v52 = vsel %vm609_vm7, %v596_v48, 0.0  ;;  %v639_v2 = vsel %vm609_vm7, %v603_v53, 0.0 }
 0x185   : > { %v616_v57 = vadd.f32 %v615_v52, %v614_v49  ;;  %v588_v58 = vpop.permute.xlu1 %587  ;;  %v554_v59 = vpop.permute.xlu0 %553  ;;  %v640_v13 = vadd.f32 %v639_v2, %v638_v5 }
 0x186   : > { %v607_v62 = vmul.f32 %v588_v58, %v515_v25  ;;  %v600_v63 = vmul.f32 %v554_v59, %v516_v35 }
 0x187   : > { %v617_v1 = vrot.slane %v616_v57, 4 }
 0x188   : > { %v652_v3 = vsel %vm609_vm7, %v607_v62, 0.0  ;;  %v628_v4 = vsel %vm609_vm7, %v600_v63, 0.0 }
 0x189   : > { %v618_v7 = vadd.f32 %v617_v1, %v616_v57  ;;  %v629_v8 = vadd.f32 %v628_v4, %v627_v0  ;;  %v592_v9 = vpop.permute.xlu1 %591  ;;  %v573_v10 = vpop.permute.xlu0 %572  ;;  %v653_v14 = vadd.f32 %v652_v3, %v651_v6 }
 0x18a   : > { %v608_v11 = vmul.f32 %v592_v9, %v516_v35  ;;  %v604_v12 = vmul.f32 %v573_v10, %v516_v35 }
 0x18b   : > { %v630_v15 = vrot.slane %v629_v8, 4  ;;  %v619_v16 = vrot.slane %v618_v7, 2 }
 0x18c   : > { %v654_v17 = vsel %vm609_vm7, %v608_v11, 0.0  ;;  %v641_v22 = vsel %vm609_vm7, %v604_v12, 0.0 }
 0x18d   : > { %v631_v23 = vadd.f32 %v630_v15, %v629_v8  ;;  %v655_v24 = vadd.f32 %v654_v17, %v653_v14  ;;  %v642_v25 = vadd.f32 %v641_v22, %v640_v13  ;;  %v620_v29 = vadd.f32 %v619_v16, %v618_v7  ;;  %v689_v37 = vpop.permute.xlu1 %688  ;;  %v682_v38 = vpop.permute.xlu0 %681 }
 0x18f   : > { %v632_v26 = vrot.slane %v631_v23, 2  ;;  %v656_v27 = vrot.slane %v655_v24, 4  ;;  %v643_v28 = vrot.slane %v642_v25, 4  ;;  %v621_v36 = vrot.slane %v620_v29, 1 }
 0x191   : > { %v633_v30 = vadd.f32 %v632_v26, %v631_v23  ;;  %v657_v31 = vadd.f32 %v656_v27, %v655_v24  ;;  %v644_v32 = vadd.f32 %v643_v28, %v642_v25  ;;  %v622_v44 = vadd.f32 %v621_v36, %v620_v29  ;;  %v703_v48 = vpop.permute.xlu1 %702  ;;  %v696_v49 = vpop.permute.xlu0 %695 }
 0x193   : > { %v634_v33 = vrot.slane %v633_v30, 1  ;;  %v658_v34 = vrot.slane %v657_v31, 2  ;;  %v645_v35 = vrot.slane %v644_v32, 2 }
 0x195   : > { %v659_v39 = vadd.f32 %v658_v34, %v657_v31  ;;  %v646_v40 = vadd.f32 %v645_v35, %v644_v32  ;;  %v635_v41 = vadd.f32 %v634_v33, %v633_v30 }
 0x197   : > { %v660_v42 = vrot.slane %v659_v39, 1  ;;  %v647_v43 = vrot.slane %v646_v40, 1  ;;  %v667_v47 = vsel %vm666_vm8, %v635_v41, %v622_v44 }
 0x199   : > { %v661_v45 = vadd.f32 %v660_v42, %v659_v39  ;;  %v648_v46 = vadd.f32 %v647_v43, %v646_v40 }
 0x19b   : > { %v669_v50 = vsel %vm668_vm9, %v648_v46, %v667_v47 }
 0x19c   : > { %v671_v51 = vsel %vm670_vm10, %v661_v45, %v669_v50 }
 0x19d   : > { %674 = vst.msk [vmem:[#allocation3] sm:$0xf] %vm673_vm11, %v671_v51  ;;  %v705_v52 = vmul.f32 %v689_v37, %v671_v51  ;;  %v704_v53 = vmul.f32 %v682_v38, %v671_v51  ;;  %v707_v54 = vmul.f32 %v703_v48, %v671_v51  ;;  %v706_v55 = vmul.f32 %v696_v49, %v671_v51 }
 0x19f   : > { %v715_v56 = vsel %vm673_vm11, %v705_v52, 0.0  ;;  %v708_v57 = vsel %vm673_vm11, %v704_v53, 0.0  ;;  %v729_v58 = vsel %vm673_vm11, %v707_v54, 0.0  ;;  %v722_v59 = vsel %vm673_vm11, %v706_v55, 0.0 }
 0x1a0   : > { %v716_v60 = vrot.slane %v715_v56, 4  ;;  %v709_v61 = vrot.slane %v708_v57, 4  ;;  %v730_v62 = vrot.slane %v729_v58, 4  ;;  %v723_v63 = vrot.slane %v722_v59, 4 }
 0x1a2   : > { %v717_v0 = vadd.f32 %v716_v60, %v715_v56  ;;  %v710_v1 = vadd.f32 %v709_v61, %v708_v57  ;;  %v731_v2 = vadd.f32 %v730_v62, %v729_v58  ;;  %v724_v3 = vadd.f32 %v723_v63, %v722_v59 }
 0x1a4   : > { %v718_v4 = vrot.slane %v717_v0, 2  ;;  %v711_v5 = vrot.slane %v710_v1, 2  ;;  %v732_v6 = vrot.slane %v731_v2, 2  ;;  %v725_v7 = vrot.slane %v724_v3, 2 }
 0x1a6   : > { %v719_v8 = vadd.f32 %v718_v4, %v717_v0  ;;  %v712_v9 = vadd.f32 %v711_v5, %v710_v1  ;;  %v733_v10 = vadd.f32 %v732_v6, %v731_v2  ;;  %v726_v11 = vadd.f32 %v725_v7, %v724_v3 }
 0x1a8   : > { %v720_v12 = vrot.slane %v719_v8, 1  ;;  %v713_v13 = vrot.slane %v712_v9, 1  ;;  %v734_v14 = vrot.slane %v733_v10, 1  ;;  %v727_v15 = vrot.slane %v726_v11, 1 }
 0x1aa   : > { %v721_v16 = vadd.f32 %v720_v12, %v719_v8  ;;  %v714_v17 = vadd.f32 %v713_v13, %v712_v9  ;;  %v728_v22 = vadd.f32 %v727_v15, %v726_v11  ;;  %v735_v24 = vadd.f32 %v734_v14, %v733_v10 }
 0x1ac   : > { %v740_v23 = vsel %vm666_vm8, %v721_v16, %v714_v17 }
 0x1ad   : > { %v741_v25 = vsel %vm668_vm9, %v728_v22, %v740_v23 }
 0x1ae   : > { %v742_v26 = vsel %vm670_vm10, %v735_v24, %v741_v25 }
 0x1af   : > { %744 = vst.msk [vmem:[#allocation4] sm:$0xf] %vm673_vm11, %v742_v26 }
 0x1b0 PF: > { %p1229_p12 = scmp.ne.s32.totalorder %s1613_s30, 1 }
 0x1b1   : > { %v762_v27 = vlaneseq (!%p1229_p12)  ;;  %v1636_v28 = vmov (!%p1229_p12), 1966171168   ;;  %v1230_v32 = vld.sshfl [vmem:[#allocation3] sm:$0x33 pattern:$0x75316420] (!%p1229_p12) }
 0x1b2   : > { %747 = sbr.rel (%p1229_p12) target bundleno = 647 (0x287), region = 84  ;;  %v760_v29 = vunpack.c.l.s4 (!%p1229_p12), %v1636_v28  ;;  %v758_v35 = vcombine.high (!%p1229_p12), %v1230_v32, %v1230_v32  ;;  %vm799_vm12 = vcmask (!%p1229_p12), 261120   ;;  %s748_s24 = sld [smem:[#allocation6]] (!%p1229_p12)  ;;  %vm1034_vm5 = vcmask (!%p1229_p12), 1041409  }
 0x1b3   : > { %v2011_v31 = vshrl.u32 (!%p1229_p12), %v762_v27, 7  ;;  %vm1036_vm6 = vcmask (!%p1229_p12), 1042434   ;;  %vm1038_vm7 = vcmask (!%p1229_p12), 1043459   ;;  %vm1042_vm8 = vcmask (!%p1229_p12), 60416  }
 0x1b4   : > { %v761_v33 = vunpack.c.0.s8 (!%p1229_p12), %v760_v29 }
 0x1b5   : > { %v777_v37 = vsub.s32 (!%p1229_p12), 0, %v2011_v31 }
 0x1b6   : > { %v1231_v30 = vld.sshfl [vmem:[#allocation4] sm:$0x33 pattern:$0x75316420] (!%p1229_p12)  ;;  %v764_v36 = vsub.s32 (!%p1229_p12), %v761_v33, %v2011_v31 }
 0x1b7   : > { %v826_v34 = vcombine.high (!%p1229_p12), %v1231_v30, %v1231_v30 }
 0x1b8   : > { %v765_v39 = vrot.slane (!%p1229_p12), %v1230_v32, %v764_v36  ;;  %v772_v40 = vrot.slane (!%p1229_p12), %v758_v35, %v764_v36  ;;  %v833_v41 = vrot.slane (!%p1229_p12), %v1231_v30, %v764_v36  ;;  %v812_v4 = vstv (!%p1229_p12), %s748_s24 }
 0x1b9   : > { %v840_v38 = vrot.slane %v826_v34, %v764_v36 }
 0x1ba   : > { %v778_v43 = vrot.slane %v765_v39, %v777_v37  ;;  %v773_v44 = vcombine.high %v765_v39, %v765_v39  ;;  %v782_v45 = vrot.slane %v772_v40, %v777_v37  ;;  %v846_v46 = vrot.slane %v833_v41, %v777_v37 }
 0x1bb   : > { %v850_v42 = vrot.slane %v840_v38, %v777_v37  ;;  %v774_v47 = vcombine.high %v772_v40, %v772_v40  ;;  %v841_v48 = vcombine.high %v833_v41, %v833_v41  ;;  %v842_v49 = vcombine.high %v840_v38, %v840_v38 }
 0x1bc   : > { %v795_v51 = vmul.f32 %v778_v43, %v1958_v18  ;;  %v786_v52 = vrot.slane %v773_v44, %v777_v37  ;;  %v796_v53 = vmul.f32 %v782_v45, %v1960_v19  ;;  %v863_v58 = vmul.f32 %v846_v46, %v1958_v18 }
 0x1bd   : > { %v864_v50 = vmul.f32 %v850_v42, %v1960_v19  ;;  %v790_v54 = vrot.slane %v774_v47, %v777_v37  ;;  %v854_v59 = vrot.slane %v841_v48, %v777_v37  ;;  %v858_v63 = vrot.slane %v842_v49, %v777_v37 }
 0x1be   : > { %v800_v56 = vsel %vm799_vm12, %v795_v51, 0.0  ;;  %v797_v57 = vmul.f32 %v786_v52, %v1962_v20  ;;  %v803_v61 = vsel %vm799_vm12, %v796_v53, 0.0  ;;  %v867_v19 = vsel %vm799_vm12, %v863_v58, 0.0 }
 0x1bf   : > { %v870_v55 = vsel %vm799_vm12, %v864_v50, 0.0  ;;  %801 = vadd.xlane.f32.xlu0 %v800_v56  ;;  %v798_v62 = vmul.f32 %v790_v54, %v1964_v21  ;;  %v865_v1 = vmul.f32 %v854_v59, %v1962_v20  ;;  %v866_v2 = vmul.f32 %v858_v63, %v1964_v21 }
 0x1c0   : > { %871 = vadd.xlane.f32.xlu1 %v870_v55  ;;  %v806_v60 = vsel %vm799_vm12, %v797_v57, 0.0 }
 0x1c1   : > { %v809_v0 = vsel %vm799_vm12, %v798_v62, 0.0  ;;  %v873_v18 = vsel %vm799_vm12, %v865_v1, 0.0  ;;  %v876_v3 = vsel %vm799_vm12, %v866_v2, 0.0 }
 0x1c3   : > { %804 = vadd.xlane.f32.xlu0 %v803_v61 }
 0x1c4   : > { %807 = vadd.xlane.f32.xlu1 %v806_v60 }
 0x1c7   : > { %868 = vadd.xlane.f32.xlu0 %v867_v19 }
 0x1c8   : > { %810 = vadd.xlane.f32.xlu1 %v809_v0 }
 0x1cb   : > { %874 = vadd.xlane.f32.xlu0 %v873_v18  ;;  %v2069_v18 = vand.u32 127, %v762_v27 }
 0x1cc   : > { %877 = vadd.xlane.f32.xlu1 %v876_v3 }
 0x24c   : > { %v802_v6 = vpop.xlane.xlu0 %801 }
 0x24d   : > { %v872_v5 = vpop.xlane.xlu1 %871  ;;  %v2033_v8 = vadd.f32 %v812_v4, %v802_v6 }
 0x24e   : > { %v2031_v7 = vadd.f32 %v872_v5, %v812_v4 }
 0x24f   : > { %v884_v21 = vsub.f32 0.0, %v2033_v8 }
 0x250   : > { %v953_v20 = vand.u32 2147483647, %v2031_v7  ;;  %v805_v10 = vpop.xlane.xlu0 %804  ;;  %v949_v2 = vmax.f32 %v2031_v7, 0.0 }
 0x251   : > { %v808_v9 = vpop.xlane.xlu1 %807  ;;  %v892_v12 = vand.u32 2147483647, %v884_v21  ;;  %v2041_v14 = vadd.f32 %v812_v4, %v805_v10  ;;  %v888_v5 = vmax.f32 %v884_v21, 0.0 }
 0x252   : > { %v957_v11 = vsub.f32 0.0, %v953_v20  ;;  %v2039_v13 = vadd.f32 %v812_v4, %v808_v9 }
 0x253   : > { %v896_v16 = vsub.f32 0.0, %v892_v12  ;;  %v885_v22 = vsub.f32 0.0, %v2041_v14 }
 0x254   : > { %v962_v15 = vmul.f32 1.442695, %v957_v11  ;;  %v886_v17 = vsub.f32 0.0, %v2039_v13  ;;  %v869_v23 = vpop.xlane.xlu0 %868 }
 0x255   : > { %v811_v24 = vpop.xlane.xlu1 %810  ;;  %v900_v25 = vmul.f32 1.442695, %v896_v16  ;;  %v893_v28 = vand.u32 2147483647, %v885_v22  ;;  %v2049_v29 = vadd.f32 %v869_v23, %v812_v4  ;;  %v889_v8 = vmax.f32 %v885_v22, 0.0 }
 0x256   : > { %1351 = vpow2.f32 %v962_v15  ;;  %v894_v26 = vand.u32 2147483647, %v886_v17  ;;  %v2051_v30 = vadd.f32 %v812_v4, %v811_v24  ;;  %v2079_v11 = vmax.f32 %v886_v17, 0.0 }
 0x257   : > { %1353 = vpow2.f32 %v900_v25  ;;  %v897_v33 = vsub.f32 0.0, %v893_v28  ;;  %v952_v34 = vand.u32 2147483647, %v2049_v29  ;;  %v948_v21 = vmax.f32 %v2049_v29, 0.0 }
 0x258   : > { %v898_v32 = vsub.f32 0.0, %v894_v26  ;;  %v887_v35 = vsub.f32 0.0, %v2051_v30  ;;  %v875_v36 = vpop.xlane.xlu0 %874 }
 0x259   : > { %v878_v37 = vpop.xlane.xlu1 %877  ;;  %v2055_v39 = vadd.f32 %v875_v36, %v812_v4  ;;  %v902_v41 = vmul.f32 1.442695, %v897_v33  ;;  %v956_v42 = vsub.f32 0.0, %v952_v34 }
 0x25a   : > { %v904_v38 = vmul.f32 1.442695, %v898_v32  ;;  %v2057_v40 = vadd.f32 %v878_v37, %v812_v4  ;;  %v895_v43 = vand.u32 2147483647, %v887_v35  ;;  %v891_v7 = vmax.f32 %v887_v35, 0.0 }
 0x25b   : > { %v954_v44 = vand.u32 2147483647, %v2055_v39  ;;  %v960_v45 = vmul.f32 1.442695, %v956_v42  ;;  %v883_v35 = vld [vmem:[#allocation5] sm:$0xf] }
 0x25c   : > { %1355 = vpow2.f32 %v904_v38  ;;  %v899_v46 = vsub.f32 0.0, %v895_v43  ;;  %v955_v47 = vand.u32 2147483647, %v2057_v40 }
 0x25d   : > { %1357 = vpow2.f32 %v902_v41  ;;  %v958_v48 = vsub.f32 0.0, %v954_v44 }
 0x25e   : > { %1359 = vpow2.f32 %v960_v45  ;;  %v906_v49 = vmul.f32 1.442695, %v899_v46  ;;  %v959_v50 = vsub.f32 0.0, %v955_v47 }
 0x25f   : > { %v964_v52 = vmul.f32 1.442695, %v958_v48 }
 0x260   : > { %v1352_v51 = vpop.eup %1351  ;;  %1361 = vpow2.f32 %v906_v49  ;;  %v966_v54 = vmul.f32 1.442695, %v959_v50 }
 0x261   : > { %v1354_v53 = vpop.eup %1353  ;;  %1363 = vpow2.f32 %v964_v52  ;;  %v977_v55 = vadd.f32 1.0, %v1352_v51  ;;  %v980_v62 = vmul.f32 -0.5, %v1352_v51  ;;  %v983_v4 = vand.u32 2147483647, %v1352_v51 }
 0x262   : > { %v908_v56 = vadd.f32 1.0, %v1354_v53  ;;  %1365 = vpow2.f32 %v966_v54  ;;  %v911_v0 = vmul.f32 -0.5, %v1354_v53  ;;  %v914_v16 = vand.u32 2147483647, %v1354_v53 }
 0x263   : > { %v981_v10 = vadd.f32 1.0, %v980_v62  ;;  %vm2085_vm13 = vcmp.lt.f32.partialorder %v983_v4, 0.0004427343 }
 0x264   : > { %1367 = vlog2.f32 %v908_v56  ;;  %v912_v15 = vadd.f32 1.0, %v911_v0  ;;  %vm2090_vm14 = vcmp.lt.f32.partialorder %v914_v16, 0.0004427343 }
 0x265   : > { %1369 = vlog2.f32 %v977_v55  ;;  %v982_v33 = vmul.f32 %v1352_v51, %v981_v10 }
 0x266   : > { %v1356_v57 = vpop.eup %1355  ;;  %v913_v14 = vmul.f32 %v1354_v53, %v912_v15 }
 0x267   : > { %v1358_v58 = vpop.eup %1357  ;;  %v926_v59 = vadd.f32 1.0, %v1356_v57  ;;  %v929_v12 = vmul.f32 -0.5, %v1356_v57  ;;  %v932_v24 = vand.u32 2147483647, %v1356_v57 }
 0x268   : > { %v917_v60 = vadd.f32 1.0, %v1358_v58  ;;  %v1360_v61 = vpop.eup %1359  ;;  %v920_v6 = vmul.f32 -0.5, %v1358_v58  ;;  %v923_v28 = vand.u32 2147483647, %v1358_v58 }
 0x269   : > { %1371 = vlog2.f32 %v926_v59  ;;  %v968_v63 = vadd.f32 1.0, %v1360_v61  ;;  %v971_v23 = vmul.f32 -0.5, %v1360_v61  ;;  %v930_v36 = vadd.f32 1.0, %v929_v12 }
 0x26a   : > { %1373 = vlog2.f32 %v917_v60  ;;  %v2063_v19 = vpop.eup %1361  ;;  %v921_v17 = vadd.f32 1.0, %v920_v6  ;;  %v974_v37 = vand.u32 2147483647, %v1360_v61  ;;  %vm2094_vm15 = vcmp.lt.f32.partialorder %v932_v24, 0.0004427343 }
 0x26b   : > { %v2065_v1 = vpop.eup %1363  ;;  %1375 = vlog2.f32 %v968_v63  ;;  %v935_v3 = vadd.f32 1.0, %v2063_v19  ;;  %v972_v29 = vadd.f32 1.0, %v971_v23  ;;  %v938_v44 = vmul.f32 -0.5, %v2063_v19 }
 0x26c   : > { %v986_v20 = vadd.f32 1.0, %v2065_v1  ;;  %v2075_v9 = vpop.eup %1365  ;;  %v989_v25 = vmul.f32 -0.5, %v2065_v1  ;;  %v922_v47 = vmul.f32 %v1358_v58, %v921_v17  ;;  %vm2099_vm0 = vcmp.lt.f32.partialorder %v923_v28, 0.0004427343 }
 0x26d   : > { %1377 = vlog2.f32 %v935_v3  ;;  %v995_v32 = vadd.f32 1.0, %v2075_v9  ;;  %v998_v49 = vmul.f32 -0.5, %v2075_v9  ;;  %v931_v53 = vmul.f32 %v1356_v57, %v930_v36 }
 0x26e   : > { %v1368_v27 = vpop.eup %1367  ;;  %1379 = vlog2.f32 %v986_v20  ;;  %v990_v45 = vadd.f32 1.0, %v989_v25  ;;  %vm2106_vm1 = vcmp.lt.f32.partialorder %v974_v37, 0.0004427343  ;;  %v973_v58 = vmul.f32 %v1360_v61, %v972_v29 }
 0x26f   : > { %v1370_v26 = vpop.eup %1369  ;;  %v910_v34 = vmul.f32 0.6931472, %v1368_v27  ;;  %1381 = vlog2.f32 %v995_v32  ;;  %v992_v59 = vand.u32 2147483647, %v2065_v1  ;;  %v939_v63 = vadd.f32 1.0, %v938_v44 }
 0x270   : > { %v979_v42 = vmul.f32 0.6931472, %v1370_v26  ;;  %v941_v0 = vand.u32 2147483647, %v2063_v19  ;;  %v991_v57 = vmul.f32 %v2065_v1, %v990_v45  ;;  %v999_v10 = vadd.f32 1.0, %v998_v49 }
 0x271   : > { %v916_v51 = vsel %vm2090_vm14, %v913_v14, %v910_v34  ;;  %v950_v23 = vmax.f32 %v2055_v39, 0.0  ;;  %vm993_vm2 = vcmp.lt.f32.partialorder %v992_v59, 0.0004427343  ;;  %v1001_v1 = vand.u32 2147483647, %v2075_v9 }
 0x272   : > { %v985_v62 = vsel %vm2085_vm13, %v982_v33, %v979_v42  ;;  %v944_v4 = vadd.f32 %v916_v51, %v888_v5  ;;  %v1020_v5 = vsub.s32 %v2069_v18, %v2011_v31  ;;  %vm942_vm3 = vcmp.lt.f32.partialorder %v941_v0, 0.0004427343 }
 0x273   : > { %v1372_v38 = vpop.eup %1371  ;;  %v1005_v16 = vadd.f32 %v985_v62, %v949_v2  ;;  %v1000_v28 = vmul.f32 %v2075_v9, %v999_v10  ;;  %v951_v31 = vmax.f32 %v2057_v40, 0.0  ;;  %vm1002_vm4 = vcmp.lt.f32.partialorder %v1001_v1, 0.0004427343 }
 0x274   : > { %v1374_v41 = vpop.eup %1373  ;;  %v928_v52 = vmul.f32 0.6931472, %v1372_v38 }
 0x275   : > { %v919_v46 = vmul.f32 0.6931472, %v1374_v41  ;;  %v1376_v50 = vpop.eup %1375 }
 0x276   : > { %v970_v56 = vmul.f32 0.6931472, %v1376_v50  ;;  %v934_v61 = vsel %vm2094_vm15, %v931_v53, %v928_v52 }
 0x277   : > { %v925_v55 = vsel %vm2099_vm0, %v922_v47, %v919_v46  ;;  %v1378_v60 = vpop.eup %1377 }
 0x278   : > { %v1380_v3 = vpop.eup %1379  ;;  %v945_v6 = vadd.f32 %v925_v55, %v889_v8  ;;  %v976_v20 = vsel %vm2106_vm1, %v973_v58, %v970_v56  ;;  %v937_v27 = vmul.f32 0.6931472, %v1378_v60  ;;  %v940_v8 = vmul.f32 %v2063_v19, %v939_v63 }
 0x279   : > { %v1004_v12 = vadd.f32 %v976_v20, %v948_v21  ;;  %v988_v15 = vmul.f32 0.6931472, %v1380_v3  ;;  %v1382_v26 = vpop.eup %1381  ;;  %v946_v21 = vadd.f32 %v934_v61, %v2079_v11 }
 0x27a   : > { %v1009_v13 = vadd.f32 %v1005_v16, %v945_v6  ;;  %v943_v39 = vsel %vm942_vm3, %v940_v8, %v937_v27  ;;  %v997_v2 = vmul.f32 0.6931472, %v1382_v26 }
 0x27b   : > { %v1008_v24 = vadd.f32 %v1004_v12, %v944_v4  ;;  %v994_v25 = vsel %vm993_vm2, %v991_v57, %v988_v15  ;;  %v947_v11 = vadd.f32 %v943_v39, %v891_v7 }
 0x27c   : > { %v1006_v17 = vadd.f32 %v994_v25, %v950_v23  ;;  %v1003_v19 = vsel %vm1002_vm4, %v1000_v28, %v997_v2  ;;  %v1025_v18 = vrot.slane %v1009_v13, %v1020_v5 }
 0x27d   : > { %v1021_v32 = vrot.slane %v1008_v24, %v1020_v5  ;;  %v1007_v36 = vadd.f32 %v1003_v19, %v951_v31 }
 0x27e   : > { %v1010_v33 = vadd.f32 %v1006_v17, %v946_v21 }
 0x27f   : > { %v1035_v37 = vsel %vm1034_vm5, %v1025_v18, %v1021_v32  ;;  %v1011_v38 = vadd.f32 %v1007_v36, %v947_v11 }
 0x280   : > { %v1029_v34 = vrot.slane %v1010_v33, %v1020_v5 }
 0x281   : > { %v1033_v14 = vrot.slane %v1011_v38, %v1020_v5 }
 0x282   : > { %v1037_v30 = vsel %vm1036_vm6, %v1029_v34, %v1035_v37 }
 0x283   : > { %v1039_v9 = vsel %vm1038_vm7, %v1033_v14, %v1037_v30 }
 0x284   : > { %v1041_v22 = vadd.f32 %v1039_v9, %v883_v35 }
 0x286   : > { %1043 = vst.msk [vmem:[#allocation5] sm:$0xf] %vm1042_vm8, %v1041_v22 }
 0x287 PF: > { %p1044_p6 = scmp.eq.s32.totalorder %s1609_s29, 1 }
 0x289   : > { %p1045_p2 = pnand %p1044_p6, %p500_p3 }
 0x28a   : > { %vm1050_vm9 = vcmask (!%p1045_p2), 60416  }
 0x28b   : > { %1048 = sbr.rel (%p1045_p2) target bundleno = 862 (0x35e), region = 88 }
 0x28d   : > { %v1049_v40 = vld [vmem:[#allocation5] sm:$0xf] (!%p1045_p2) }
 0x28e   : > { %v1051_v29 = vsel (!%p1045_p2), %vm1050_vm9, %v1049_v40, 0.0 }
 0x28f   : > { %1052 = vadd.xlane.f32.xlu0 (!%p1045_p2), %v1051_v29 }
 0x31c   : > { %v1053_v41 = vpop.xlane.xlu0 %1052 }
 0x31d   : > { %v1054_v42 = vrot.slane %v1053_v41, 4 }
 0x31f   : > { %v1055_v43 = vadd.f32 %v1054_v42, %v1053_v41 }
 0x321   : > { %v1056_v44 = vrot.slane %v1055_v43, 2 }
 0x323   : > { %v1057_v45 = vadd.f32 %v1056_v44, %v1055_v43 }
 0x325   : > { %v1058_v46 = vrot.slane %v1057_v45, 1 }
 0x327   : > { %v1059_v47 = vadd.f32 %v1058_v46, %v1057_v45 }
 0x329   : > { %1236 = vpush %v1059_v47 }
 0x35a   : > { %s1237_s20 = spop %1236 }
 0x35b   : > { %s1063_s22 = smul.f32 0.0078125, %s1237_s20 }
 0x35d   : > { %1065 = sst [smem:[#allocation16]] %s1063_s22 }
 0x35e PF: > { %p1274_p5 = scmp.eq.s32.totalorder %s1720_s10, 3  ;;  %s1531_s8 = scalar_lea.hbm %s2180_s7, 16 }
 0x35f   : > { %p1532_p0 = scmp.ne.s32.totalorder %s2180_s7, %s1531_s8  ;;  %p1537_p1 = scmp.lt.u32.totalorder %s1531_s8, %s2180_s7 }
 0x361   : > { %p1533_p13 = pnand %p1532_p0, %p1274_p5 }
 0x363   : > { %p1534_p11 = pneg %p1533_p13 }
 0x365   : > { %p1539_p4 = pnand %p1537_p1, %p1534_p11 }
 0x367   : > { %1542 = shalt.err (!%p1539_p4)
}
 0x368   : > { %s1637_s1 = smov [#allocation16]  }
 0x369   : > { %1251 = dma.smem_to_hbm (%p1274_p5), %s1637_s1, 16, %s2180_s7, [#allocation9]  }
 0x36a   : > { %1592 = dma.done.wait (%p1274_p5), [#allocation9], 16  }
 0x36b   : > { %1594 = vsyncadd (%p1274_p5), [#allocation9], 4294967280 }
 0x36c   : > { %1079 = sfence }
 0x36d PF: > { %s28_s9 = sadd.s32 1, %s1625_s9   ;;  %s2235_s10 = sld [smem:[#allocation22_spill]] }
 0x36e   : > { %p25_p9 = scmp.ge.s32.totalorder %s28_s9, 6   ;;  %s2236_s28 = sld [smem:[#allocation27_spill]] }
 0x36f   : > { %s2237_s29 = sld [smem:[#allocation23_spill]]  ;;  %s2238_s30 = sld [smem:[#allocation24_spill]] }
 0x370   : > { %s2239_s8 = sld [smem:[#allocation25_spill]]  ;;  %s2240_s6 = sld [smem:[#allocation26_spill]] }
 0x371   : > { %s2241_s26 = smov %s1601_s27  ;;  %27 = sbr.rel (!%p25_p9) target bundleno = 14 (0xe), region = 147 }
 0x373   : > { %s2242_s27 = smov %s2235_s10 }
 0x378   :  { %1085 = vsyncpa [#allocation8], 1 }
 0x379   :  { %1087 = vsyncpa [#allocation8 + $0x1], 1 }
 0x37a   :  { %1088 = vsyncpa [#allocation11], 1 }
 0x37b   :  { %1090 = vsyncpa [#allocation11 + $0x1], 1 }
 0x37c   :  { %1091 = vsyncpa [#allocation14], 1 }
 0x37d   :  { %1093 = vsyncpa [#allocation14 + $0x1], 1 }
 0x37e   :  { %1094 = vsyncpa [#allocation9], 1 }
 0x37f   :  { %1096 = vsyncpa [#allocation9 + $0x1], 1 }

</bundles_post_ra>
